<compile_context>
chip_gen: v5e
topology: v5e:2x2
jax: 0.10.0
libtpu: 0.0.40
codegen_flags: <defaults>
</compile_context>

<pallas_src>
import jax
import jax.numpy as jnp
from jax.experimental import pallas as pl
from jax.experimental.pallas import tpu as pltpu


def net5_kernel(a_ref, x0_ref, wl_ref, wc_ref, b_ref, o_ref):
    """One grid step == one Net5 layer. o_ref carries node features across layers."""
    layer = pl.program_id(0)

    @pl.when(layer == 0)
    def _():
        o_ref[...] = x0_ref[...]          # seed the carried features with the input

    x = o_ref[...]                        # [N, C] resident in VMEM across the whole grid
    # SAGEConv mean aggregation as a dense matmul on the MXU.
    agg = jnp.dot(a_ref[...], x, preferred_element_type=jnp.float32)       # [N, C]
    # lin_l(agg) + (lin_r + Linear)(x) + fused bias  -- two matmuls per layer total.
    y = (jnp.dot(agg, wl_ref[...], preferred_element_type=jnp.float32)
         + jnp.dot(x, wc_ref[...], preferred_element_type=jnp.float32)
         + b_ref[...])                                                      # [N, C]
    o_ref[...] = y.astype(o_ref.dtype)


def net5_forward(x, edge_index, w_l, b_l, w_r, w_lin, b_lin):
    """x: [N, C] f32; edge_index: [2, E] int32 (row=src, col=dst).
    Per-layer params stacked on a leading layer axis:
      w_l, w_r, w_lin: [L, C, C] (applied as x @ W), b_l, b_lin: [L, C]."""
    n, c = x.shape
    num_layers = w_l.shape[0]

    # --- plain-JAX preprocessing: row-normalized mean-aggregation operator ---
    src, dst = edge_index[0], edge_index[1]
    adj = jnp.zeros((n, n), jnp.float32).at[dst, src].add(1.0)
    deg = adj.sum(axis=1, keepdims=True)
    a = jnp.where(deg > 0, adj / jnp.maximum(deg, 1.0), 0.0)

    # --- fuse SAGEConv root weight with the parallel Linear (and their biases) ---
    w_comb = w_r + w_lin                              # [L, C, C]
    b_comb = (b_l + b_lin).reshape(num_layers, 1, c)  # [L, 1, C]

    return pl.pallas_call(
        net5_kernel,
        out_shape=jax.ShapeDtypeStruct((n, c), x.dtype),
        grid=(num_layers,),
        in_specs=[
            pl.BlockSpec((n, n), lambda l: (0, 0)),           # A       (resident all layers)
            pl.BlockSpec((n, c), lambda l: (0, 0)),           # x0      (resident all layers)
            pl.BlockSpec((None, c, c), lambda l: (l, 0, 0)),  # W_l     (per-layer slice)
            pl.BlockSpec((None, c, c), lambda l: (l, 0, 0)),  # W_r+W_lin
            pl.BlockSpec((None, 1, c), lambda l: (l, 0, 0)),  # b_l+b_lin
        ],
        out_specs=pl.BlockSpec((n, c), lambda l: (0, 0)),     # carried features / final output
        compiler_params=pltpu.CompilerParams(
            dimension_semantics=("arbitrary",)),              # layers are sequential
    )(a, x, w_l, w_comb, b_comb)


def net5_reference(x, edge_index, w_l, b_l, w_r, w_lin, b_lin):
    """Plain-JAX reference with explicit scatter-mean (PyG SAGEConv semantics)."""
    n = x.shape[0]
    src, dst = edge_index[0], edge_index[1]
    for layer in range(w_l.shape[0]):
        agg_sum = jnp.zeros_like(x).at[dst].add(x[src])
        cnt = jnp.zeros((n, 1), jnp.float32).at[dst].add(1.0)
        agg = jnp.where(cnt > 0, agg_sum / jnp.maximum(cnt, 1.0), 0.0)
        conv = agg @ w_l[layer] + b_l[layer] + x @ w_r[layer]     # SAGEConv (lin_r has no bias)
        lin = x @ w_lin[layer] + b_lin[layer]                     # Linear(16, 16)
        x = conv + lin
    return x


if __name__ == "__main__":
    N, C, L, E = 32, 16, 2, 64   # 32 nodes, 16 features, num_layers=2, 64 edges

    key = jax.random.PRNGKey(0)
    k_x, k_src, k_dst, k_wl, k_bl, k_wr, k_wlin, k_blin = jax.random.split(key, 8)

    x = jax.random.normal(k_x, (N, C), dtype=jnp.float32)
    edge_index = jnp.stack([
        jax.random.randint(k_src, (E,), 0, N, dtype=jnp.int32),
        jax.random.randint(k_dst, (E,), 0, N, dtype=jnp.int32),
    ])

    scale = 0.1
    w_l = scale * jax.random.normal(k_wl, (L, C, C), dtype=jnp.float32)
    b_l = scale * jax.random.normal(k_bl, (L, C), dtype=jnp.float32)
    w_r = scale * jax.random.normal(k_wr, (L, C, C), dtype=jnp.float32)
    w_lin = scale * jax.random.normal(k_wlin, (L, C, C), dtype=jnp.float32)
    b_lin = scale * jax.random.normal(k_blin, (L, C), dtype=jnp.float32)

    out = net5_forward(x, edge_index, w_l, b_l, w_r, w_lin, b_lin)
    out = jax.block_until_ready(out)

    ref = net5_reference(x, edge_index, w_l, b_l, w_r, w_lin, b_lin)
    assert out.shape == (N, C)
    assert jnp.allclose(out, ref, atol=1e-4, rtol=1e-4), "mismatch vs reference"

    print("KERNEL_OK")
</pallas_src>

<mosaic_0001>
module attributes {stable_mosaic.version = 11 : i64} {
  func.func @net5_kernel(%arg0: i32, %arg1: memref<32x32xf32, #tpu.memory_space<vmem>>, %arg2: memref<32x16xf32, #tpu.memory_space<vmem>>, %arg3: memref<1x16x16xf32, #tpu.memory_space<vmem>>, %arg4: memref<1x16x16xf32, #tpu.memory_space<vmem>>, %arg5: memref<1x1x16xf32, #tpu.memory_space<vmem>>, %arg6: memref<32x16xf32, #tpu.memory_space<vmem>>) attributes {dimension_semantics = [#tpu.dimension_semantics<arbitrary>], iteration_bounds = array<i64: 2>, scalar_prefetch = 0 : i64, scratch_operands = 0 : i64, tpu.core_type = #tpu.core_type<tc>, window_params = [{pipeline_mode = #tpu.pipeline_mode<synchronous>, transform_indices = @transform_0, window_bounds = array<i64: 32, 32>}, {pipeline_mode = #tpu.pipeline_mode<synchronous>, transform_indices = @transform_1, window_bounds = array<i64: 32, 16>}, {transform_indices = @transform_2, window_bounds = array<i64: 1, 16, 16>}, {transform_indices = @transform_3, window_bounds = array<i64: 1, 16, 16>}, {transform_indices = @transform_4, window_bounds = array<i64: 1, 1, 16>}, {pipeline_mode = #tpu.pipeline_mode<synchronous>, transform_indices = @transform_5, window_bounds = array<i64: 32, 16>}]} {
    %c0_i32 = arith.constant 0 : i32
    %0 = arith.cmpi eq, %arg0, %c0_i32 : i32
    %1 = arith.extui %0 : i1 to i32
    %c0_i32_0 = arith.constant 0 : i32
    %2 = arith.cmpi ne, %1, %c0_i32_0 : i32
    scf.if %2 {
      %c0_17 = arith.constant 0 : index
      %c0_18 = arith.constant 0 : index
      %18 = vector.load %arg2[%c0_17, %c0_18] : memref<32x16xf32, #tpu.memory_space<vmem>>, vector<32x16xf32>
      %c0_19 = arith.constant 0 : index
      %c0_20 = arith.constant 0 : index
      %19 = vector.load %arg6[%c0_19, %c0_20] : memref<32x16xf32, #tpu.memory_space<vmem>>, vector<32x16xf32>
      tpu.vector_store %arg6[%c0_19, %c0_20], %18 {strides = array<i32>} : memref<32x16xf32, #tpu.memory_space<vmem>>, vector<32x16xf32>,
    } else {
    }
    %c0 = arith.constant 0 : index
    %c0_1 = arith.constant 0 : index
    %3 = vector.load %arg6[%c0, %c0_1] : memref<32x16xf32, #tpu.memory_space<vmem>>, vector<32x16xf32>
    %c0_2 = arith.constant 0 : index
    %c0_3 = arith.constant 0 : index
    %4 = vector.load %arg1[%c0_2, %c0_3] : memref<32x32xf32, #tpu.memory_space<vmem>>, vector<32x32xf32>
    %cst = arith.constant dense<0.000000e+00> : vector<32x16xf32>
    %5 = tpu.matmul %4, %3, %cst {dimension_numbers = #tpu.dot_dimension_numbers<[1], [0], [0], [1], [0, 0, 1, 1], [], []>} : vector<32x32xf32>, vector<32x16xf32>, vector<32x16xf32> -> vector<32x16xf32>
    %c0_4 = arith.constant 0 : index
    %c0_5 = arith.constant 0 : index
    %c0_6 = arith.constant 0 : index
    %6 = vector.load %arg3[%c0_4, %c0_5, %c0_6] : memref<1x16x16xf32, #tpu.memory_space<vmem>>, vector<1x16x16xf32>
    %7 = vector.shape_cast %6 : vector<1x16x16xf32> to vector<16x16xf32>
    %cst_7 = arith.constant dense<0.000000e+00> : vector<32x16xf32>
    %8 = tpu.matmul %5, %7, %cst_7 {dimension_numbers = #tpu.dot_dimension_numbers<[1], [0], [0], [1], [0, 0, 1, 1], [], []>} : vector<32x16xf32>, vector<16x16xf32>, vector<32x16xf32> -> vector<32x16xf32>
    %c0_8 = arith.constant 0 : index
    %c0_9 = arith.constant 0 : index
    %c0_10 = arith.constant 0 : index
    %9 = vector.load %arg4[%c0_8, %c0_9, %c0_10] : memref<1x16x16xf32, #tpu.memory_space<vmem>>, vector<1x16x16xf32>
    %10 = vector.shape_cast %9 : vector<1x16x16xf32> to vector<16x16xf32>
    %cst_11 = arith.constant dense<0.000000e+00> : vector<32x16xf32>
    %11 = tpu.matmul %3, %10, %cst_11 {dimension_numbers = #tpu.dot_dimension_numbers<[1], [0], [0], [1], [0, 0, 1, 1], [], []>} : vector<32x16xf32>, vector<16x16xf32>, vector<32x16xf32> -> vector<32x16xf32>
    %12 = arith.addf %8, %11 : vector<32x16xf32>
    %c0_12 = arith.constant 0 : index
    %c0_13 = arith.constant 0 : index
    %c0_14 = arith.constant 0 : index
    %13 = vector.load %arg5[%c0_12, %c0_13, %c0_14] : memref<1x1x16xf32, #tpu.memory_space<vmem>>, vector<1x1x16xf32>
    %14 = vector.shape_cast %13 : vector<1x1x16xf32> to vector<1x16xf32>
    %15 = vector.broadcast %14 : vector<1x16xf32> to vector<32x16xf32>
    %16 = arith.addf %12, %15 : vector<32x16xf32>
    %c0_15 = arith.constant 0 : index
    %c0_16 = arith.constant 0 : index
    %17 = vector.load %arg6[%c0_15, %c0_16] : memref<32x16xf32, #tpu.memory_space<vmem>>, vector<32x16xf32>
    tpu.vector_store %arg6[%c0_15, %c0_16], %16 {strides = array<i32>} : memref<32x16xf32, #tpu.memory_space<vmem>>, vector<32x16xf32>,
    return
  }
  func.func @transform_0(%arg0: i32) -> (i32, i32) {
    %c0_i32 = arith.constant 0 : i32
    %c0_i32_0 = arith.constant 0 : i32
    %c0_i32_1 = arith.constant 0 : i32
    return %c0_i32, %c0_i32_0 : i32, i32
  }
  func.func @transform_1(%arg0: i32) -> (i32, i32) {
    %c0_i32 = arith.constant 0 : i32
    %c0_i32_0 = arith.constant 0 : i32
    %c0_i32_1 = arith.constant 0 : i32
    return %c0_i32, %c0_i32_0 : i32, i32
  }
  func.func @transform_2(%arg0: i32) -> (i32, i32, i32) {
    %c0_i32 = arith.constant 0 : i32
    %c0_i32_0 = arith.constant 0 : i32
    %c0_i32_1 = arith.constant 0 : i32
    return %arg0, %c0_i32, %c0_i32_0 : i32, i32, i32
  }
  func.func @transform_3(%arg0: i32) -> (i32, i32, i32) {
    %c0_i32 = arith.constant 0 : i32
    %c0_i32_0 = arith.constant 0 : i32
    %c0_i32_1 = arith.constant 0 : i32
    return %arg0, %c0_i32, %c0_i32_0 : i32, i32, i32
  }
  func.func @transform_4(%arg0: i32) -> (i32, i32, i32) {
    %c0_i32 = arith.constant 0 : i32
    %c0_i32_0 = arith.constant 0 : i32
    %c0_i32_1 = arith.constant 0 : i32
    return %arg0, %c0_i32, %c0_i32_0 : i32, i32, i32
  }
  func.func @transform_5(%arg0: i32) -> (i32, i32) {
    %c0_i32 = arith.constant 0 : i32
    %c0_i32_0 = arith.constant 0 : i32
    %c0_i32_1 = arith.constant 0 : i32
    return %c0_i32, %c0_i32_0 : i32, i32
  }
}

</mosaic_0001>

<bundles_post_ra>
// kernel: tpu_custom_call.1
= control target key start
LH: loop header
LB: loop body
LE: loop exit
PB: predicated region body
PF: predicated region fallthrough
CT: control target
= control target key end

     0   :  { %10 = vsyncpa [#allocation3], 0  ;;  %s954_s0 = inlined_call_operand.vmem [shape: f32[32,32], index: 0, kind: input, shape index: {}]   ;;  %s955_s1 = inlined_call_operand.vmem [shape: f32[32,16], index: 1, kind: input, shape index: {}]   ;;  %s956_s2 = inlined_call_operand.hbm [shape: f32[2,16,16], index: 2, kind: input, shape index: {}]   ;;  %s957_s3 = inlined_call_operand.hbm [shape: f32[2,16,16], index: 3, kind: input, shape index: {}]   ;;  %s958_s4 = inlined_call_operand.vmem [shape: f32[2,1,16], index: 4, kind: input, shape index: {}]   ;;  %s959_s5 = inlined_call_operand.vmem [shape: f32[32,16], index: 5, kind: output, shape index: {}]  }
   0x1   :  { %12 = vsyncpa [#allocation3 + $0x1], 0 }
   0x2   :  { %13 = vsyncpa [#allocation5], 0 }
   0x3   :  { %15 = vsyncpa [#allocation5 + $0x1], 0  ;;  %s733_s18 = smov 0   ;;  %s735_s19 = smov 0  }
   0x4   :  { %s737_s20 = smov 0   ;;  %s739_s21 = smov 0  }
   0x5 LB: > { %s752_s22 = sadd.s32 4294967295, %s699_s21   ;;  %s755_s23 = sadd.s32 1, %s699_s21   ;;  %s699_s21 = sphi %s739_s21, %s967_s21   ;;  %s695_s20 = sphi %s737_s20, %s966_s20   ;;  %s691_s19 = sphi %s735_s19, %s965_s19   ;;  %s687_s18 = sphi %s733_s18, %s964_s18  }
   0x6   : > { %s67_s24 = ssub.s32 %s699_s21, %s755_s23  ;;  %s70_s25 = sadd.s32 1, %s695_s20 }
   0x7   : > { %p68_p0 = scmp.eq.s32.totalorder %s67_s24, 0  ;;  %p77_p1 = scmp.ne.s32.totalorder %s695_s20, %s691_s19 }
   0x8   : > { %p78_p2 = scmp.eq.s32.totalorder %s699_s21, 0  ;;  %p83_p3 = scmp.ne.s32.totalorder %s691_s19, %s687_s18 }
   0x9   : > { %s765_s26 = scalar_select %p68_p0, %s695_s20, %s70_s25  }
   0xa   : > { %p767_p4 = por %p78_p2, %p77_p1  ;;  %p84_p5 = scmp.eq.s32.totalorder %s752_s22, 0 }
   0xb   : > { %p565_p6 = scmp.lt.s32.totalorder %s699_s21, 2  ;;  %s778_s29 = sand.u32 1, %s695_s20  }
   0xc   : > { %p773_p7 = por %p84_p5, %p83_p3  ;;  %s524_s30 = sshll.u32 %s778_s29, 4 }
   0xd   : > { %s548_s6 = sshll.u32 %s699_s21, 4  ;;  %s190_s10 = scalar_lea.vmem [#allocation2], %s524_s30 }
   0xe   : > { %s195_s9 = scalar_lea.hbm %s956_s2, %s548_s6  ;;  %s198_s11 = sshll.u32 %s190_s10, 4  ;;  %s199_s11 = int_to_ptr.vmem [resolvable:$true] %s198_s11 }
   0xf   : > { %s196_s12 = sshll.u32 %s195_s9, 4  ;;  %p791_p8 = pnand %p565_p6, %p767_p4  ;;  %s197_s12 = int_to_ptr.hbm [resolvable:$true] %s196_s12 }
  0x10   : > { %p530_p9 = scmp.ge.s32.totalorder %s699_s21, 1  ;;  %s187_s14 = scalar_lea.sflag [#allocation3], %s778_s29 }
  0x11   : > { %s601_s15 = sshra.s32 %s197_s12, 4  ;;  %p605_p11 = pneg %p791_p8  ;;  %s602_s15 = int_to_ptr.hbm [resolvable:$true] %s601_s15 }
  0x12   : > { %s603_s16 = scalar_lea.hbm %s602_s15, 16  ;;  %s608_s24 = scalar_lea.hbm %s956_s2, 32 }
  0x13   : > { %p604_p10 = scmp.ne.s32.totalorder %s602_s15, %s603_s16  ;;  %p609_p0 = scmp.lt.s32.totalorder %s602_s15, %s956_s2 }
  0x14   : > { %p610_p1 = scmp.lt.s32.totalorder %s608_s24, %s603_s16 }
  0x15   : > { %p606_p12 = pnand %p605_p11, %p604_p10 }
  0x16   : > { %p611_p2 = por %p610_p1, %p609_p0 }
  0x17   : > { %p607_p13 = pneg %p606_p12 }
  0x19   : > { %p612_p3 = pnand %p611_p2, %p607_p13 }
  0x1b   : > { %615 = shalt.err (!%p612_p3)
}
  0x1c   : > { %s701_s7 = smov 128   ;;  %s702_s8 = smov 8  }
  0x1d   : > { %561 = dma.hbm_to_vmem [thread:$0]  (!%p791_p8), %s197_s12, 256, %s199_s11, %s187_s14, %s701_s7, %s701_s7, %s702_s8  }
  0x1e   : > { %p234_p4 = scmp.lt.s32.totalorder %s699_s21, 3  ;;  %s217_s15 = scalar_lea.hbm %s957_s3, %s548_s6 }
  0x1f   : > { %s218_s17 = sshll.u32 %s217_s15, 4  ;;  %s212_s18 = scalar_lea.vmem [#allocation4], %s524_s30  ;;  %s219_s17 = int_to_ptr.hbm [resolvable:$true] %s218_s17 }
  0x20   : > { %p818_p5 = pnand %p530_p9, %p234_p4  ;;  %s220_s24 = sshll.u32 %s212_s18, 4  ;;  %s221_s24 = int_to_ptr.vmem [resolvable:$true] %s220_s24 }
  0x21   : > { %s209_s25 = scalar_lea.sflag [#allocation5], %s778_s29  ;;  %s631_s27 = sshra.s32 %s219_s17, 4  ;;  %s632_s27 = int_to_ptr.hbm [resolvable:$true] %s631_s27 }
  0x22   : > { %s633_s11 = scalar_lea.hbm %s632_s27, 16  ;;  %s638_s12 = scalar_lea.hbm %s957_s3, 32 }
  0x23   : > { %p634_p6 = scmp.ne.s32.totalorder %s632_s27, %s633_s11  ;;  %p639_p9 = scmp.lt.s32.totalorder %s632_s27, %s957_s3 }
  0x24   : > { %p640_p13 = scmp.lt.s32.totalorder %s638_s12, %s633_s11 }
  0x25   : > { %p636_p10 = pnand %p634_p6, %p605_p11 }
  0x26   : > { %p641_p0 = por %p640_p13, %p639_p9 }
  0x27   : > { %p637_p12 = pneg %p636_p10 }
  0x29   : > { %p642_p1 = pnand %p641_p0, %p637_p12 }
  0x2b   : > { %645 = shalt.err (!%p642_p1)
}
  0x2c   : > { %564 = dma.hbm_to_vmem [thread:$0]  (!%p791_p8), %s219_s17, 256, %s221_s24, %s209_s25, %s701_s7, %s701_s7, %s702_s8  }
  0x2d   : > { %238 = sbr.rel (%p818_p5) target bundleno = 367 (0x16f), region = 40  ;;  %s240_s29 = sand.u32 (!%p818_p5), 1, %s691_s19  }
  0x2e   : > { %s531_s30 = sshll.u32 (!%p818_p5), %s240_s29, 4  ;;  %s241_s10 = scalar_lea.sflag (!%p818_p5), [#allocation3], %s240_s29 }
  0x2f   : > { %s839_s15 = scalar_lea.vmem (!%p818_p5), [#allocation2], %s531_s30 }
  0x32   : > { %678 = dma.done.wait (%p773_p7), %s241_s10, 256  }
  0x33   : > { %680 = vsyncadd (%p773_p7), %s241_s10, 4294967040  ;;  %s251_s18 = scalar_lea.sflag [#allocation5], %s240_s29  ;;  %s845_s27 = scalar_lea.vmem [#allocation4], %s531_s30 }
  0x34   : > { %682 = dma.done.wait (%p773_p7), %s251_s18, 256  }
  0x35   : > { %684 = vsyncadd (%p773_p7), %s251_s18, 4294967040  ;;  %p285_p8 = scmp.lt.s32.totalorder %s752_s22, 1  ;;  %p533_p11 = scmp.ne.s32.totalorder %s752_s22, 0 }
  0x37   : > { %s853_s13 = scalar_select %p285_p8, %s752_s22, 1 }
  0x38   : > { %291 = sbr.rel (%p533_p11) target bundleno = 66 (0x42), region = 52 }
  0x39   : > { %s287_s16 = scalar_lea.vmem %s958_s4, %s853_s13 }
  0x3d   : > { %v292_v0 = vld [vmem:[%s955_s1] sm:$0xff]  ;;  %vm296_vm0 = vcmask 130048   ;;  %v293_v1 = vld [vmem:[%s955_s1 + $0x8] sm:$0xff]  ;;  %v294_v2 = vld [vmem:[%s955_s1 + $0x10] sm:$0xff] }
  0x3e   : > { %297 = vst.msk [vmem:[%s959_s5] sm:$0xff] %vm296_vm0, %v292_v0  ;;  %v295_v3 = vld [vmem:[%s955_s1 + $0x18] sm:$0xff] }
  0x3f   : > { %298 = vst.msk [vmem:[%s959_s5 + $0x8] sm:$0xff] %vm296_vm0, %v293_v1 }
  0x40   : > { %299 = vst.msk [vmem:[%s959_s5 + $0x10] sm:$0xff] %vm296_vm0, %v294_v2 }
  0x41   : > { %300 = vst.msk [vmem:[%s959_s5 + $0x18] sm:$0xff] %vm296_vm0, %v295_v3 }
  0x42 PF: > { %v352_v7 = vld [vmem:[%s839_s15 + $0x8] sm:$0xff]  ;;  %v305_v9 = vld [vmem:[%s954_s0] sm:$0xff]  ;;  %vm309_vm1 = vcmask 261120   ;;  %v307_v11 = vld [vmem:[%s954_s0 + $0x10] sm:$0xff]  ;;  %vm355_vm2 = vcmask 130048  }
  0x43   : > { %423 = vmatpush.msra.mxu2 %v352_v7  ;;  %v306_v10 = vld [vmem:[%s954_s0 + $0x8] sm:$0xff]  ;;  %v308_v12 = vld [vmem:[%s954_s0 + $0x18] sm:$0xff]  ;;  %v351_v13 = vld [vmem:[%s839_s15] sm:$0xff] }
  0x44   : > { %v354_v14 = vld [vmem:[%s845_s27 + $0x8] sm:$0xff]  ;;  %v353_v15 = vld [vmem:[%s845_s27] sm:$0xff] }
  0x45   : > { %v301_v8 = vld [vmem:[%s959_s5] sm:$0xff]  ;;  %424 = vmatpush.msra.mxu2 %v351_v13  ;;  %382 = vmatpush.msra.mxu1 %v354_v14 }
  0x46   : > { %v302_v6 = vld [vmem:[%s959_s5 + $0x8] sm:$0xff]  ;;  %v600_v21 = vld [vmem:[%s287_s16] ss:$0 sm:$0xff] }
  0x47   : > { %v303_v5 = vld [vmem:[%s959_s5 + $0x10] sm:$0xff]  ;;  %383 = vmatpush.msra.mxu1 %v353_v15 }
  0x48   : > { %v304_v4 = vld [vmem:[%s959_s5 + $0x18] sm:$0xff]  ;;  %538 = vmatmul.msk.f32.vlgmr.msra.gmra.mxu1 %vm355_vm2, %v301_v8 }
  0x49   : > { %334 = vmatpush.msra.mxu0 %v304_v4  ;;  %550 = vmatpush.msra.mxu3 %v304_v4 }
  0x4b   : > { %335 = vmatpush.msra.mxu0 %v303_v5  ;;  %551 = vmatpush.msra.mxu3 %v303_v5 }
  0x4d   : > { %336 = vmatpush.msra.mxu0 %v302_v6  ;;  %552 = vmatpush.msra.mxu3 %v302_v6 }
  0x4f   : > { %337 = vmatpush.msra.mxu0 %v301_v8  ;;  %553 = vmatpush.msra.mxu3 %v301_v8 }
  0x50   : > { %534 = vmatmul.msk.f32.vlgmr.msra.gmra.mxu0 %vm309_vm1, %v305_v9  ;;  %535 = vmatmul.msk.f32.vlgmr.msra.gmra.mxu3 %vm309_vm1, %v306_v10 }
  0x51   : > { %539 = vmatmul.msk.f32.gmra.mxu1 %vm355_vm2, %v302_v6 }
  0x58   : > { %536 = vmatmul.msk.f32.gmra.mxu3 %vm309_vm1, %v307_v11 }
  0x59   : > { %540 = vmatmul.msk.f32.gmra.mxu1 %vm355_vm2, %v303_v5 }
  0x60   : > { %537 = vmatmul.msk.f32.gmra.mxu3 %vm309_vm1, %v308_v12 }
  0x61   : > { %541 = vmatmul.msk.f32.gmra.mxu1 %vm355_vm2, %v304_v4 }
  0xc5   : > { %v385_v20 = vpop.f32.mrf.mxu1 }
  0xcd   : > { %v339_v16 = vpop.f32.mrf.mxu0 }
  0xce   : > { %542 = vmatmul.msk.f32.vlgmr.msra.gmra.mxu2 %vm355_vm2, %v339_v16  ;;  %v388_v24 = vpop.f32.mrf.mxu1 }
  0xd3   : > { %v342_v17 = vpop.f32.mrf.mxu3 }
  0xd6   : > { %543 = vmatmul.msk.f32.gmra.mxu2 %vm355_vm2, %v342_v17  ;;  %v391_v29 = vpop.f32.mrf.mxu1 }
  0xdb   : > { %v345_v18 = vpop.f32.mrf.mxu3 }
  0xde   : > { %544 = vmatmul.msk.f32.gmra.mxu2 %vm355_vm2, %v345_v18  ;;  %v394_v33 = vpop.f32.mrf.mxu1 }
  0xe3   : > { %v348_v19 = vpop.f32.mrf.mxu3 }
  0xe6   : > { %545 = vmatmul.msk.f32.gmra.mxu2 %vm355_vm2, %v348_v19 }
 0x151   : > { %v426_v22 = vpop.f32.mrf.mxu2 }
 0x152   : > { %v427_v23 = vadd.f32 %v426_v22, %v385_v20 }
 0x154   : > { %v442_v25 = vadd.f32 %v600_v21, %v427_v23 }
 0x156   : > { %446 = vst.msk [vmem:[%s959_s5] sm:$0xff] %vm355_vm2, %v442_v25 }
 0x159   : > { %v429_v26 = vpop.f32.mrf.mxu2 }
 0x15a   : > { %v430_v27 = vadd.f32 %v429_v26, %v388_v24 }
 0x15c   : > { %v443_v28 = vadd.f32 %v600_v21, %v430_v27 }
 0x15e   : > { %447 = vst.msk [vmem:[%s959_s5 + $0x8] sm:$0xff] %vm355_vm2, %v443_v28 }
 0x161   : > { %v432_v30 = vpop.f32.mrf.mxu2 }
 0x162   : > { %v433_v31 = vadd.f32 %v432_v30, %v391_v29 }
 0x164   : > { %v444_v32 = vadd.f32 %v600_v21, %v433_v31 }
 0x166   : > { %448 = vst.msk [vmem:[%s959_s5 + $0x10] sm:$0xff] %vm355_vm2, %v444_v32 }
 0x169   : > { %v435_v34 = vpop.f32.mrf.mxu2 }
 0x16a   : > { %v436_v35 = vadd.f32 %v435_v34, %v394_v33 }
 0x16c   : > { %v445_v36 = vadd.f32 %v600_v21, %v436_v35 }
 0x16e   : > { %449 = vst.msk [vmem:[%s959_s5 + $0x18] sm:$0xff] %vm355_vm2, %v445_v36 }
 0x16f PF: > { %p18_p7 = scmp.ge.s32.totalorder %s755_s23, 4   ;;  %s964_s18 = smov %s691_s19 }
 0x170   : > { %s965_s19 = smov %s695_s20  ;;  %s966_s20 = smov %s765_s26 }
 0x171   : > { %s967_s21 = smov %s755_s23  ;;  %20 = sbr.rel (!%p18_p7) target bundleno = 5 (0x5), region = 96 }
 0x176   :  { %461 = vsyncpa [#allocation3], 1 }
 0x177   :  { %463 = vsyncpa [#allocation3 + $0x1], 1 }
 0x178   :  { %464 = vsyncpa [#allocation5], 1 }
 0x179   :  { %466 = vsyncpa [#allocation5 + $0x1], 1 }

</bundles_post_ra>
